<compile_context>
chip_gen: v7x
topology: tpu7x:2x2x1
jax: 0.10.0
libtpu: 0.0.40
codegen_flags: <defaults>
</compile_context>

<pallas_src>
import functools

import numpy as np
import jax
import jax.numpy as jnp
from jax.experimental import pallas as pl
from jax.experimental.pallas import tpu as pltpu


BIN_SIZES = [1, 2, 3, 6]
COMPUTE_DTYPE = jnp.bfloat16      # activations/weights; accumulation stays f32


def _round_up(a, b):
    return (a + b - 1) // b * b


def _pick_row_tile(h, target=32):
    t = min(h, target)
    while h % t:
        t -= 1
    return t


def _vmem_budget():
    """Generation-aware VMEM scoped limit (and 'big VMEM' flag for tile sizes)."""
    try:
        cap = int(pltpu.get_tpu_info().vmem_capacity_bytes)
    except Exception:                     # pragma: no cover - conservative fallback
        cap = 64 * 1024 * 1024            # assume v7x-sized VMEM if query fails
    limit = max(32 * 1024 * 1024, min(cap - 24 * 1024 * 1024, 112 * 1024 * 1024))
    return cap, limit


_VMEM_CAP, _VMEM_LIMIT = _vmem_budget()
_BIG_VMEM = _VMEM_CAP >= 96 * 1024 * 1024     # v5e/v6e (128 MiB) vs v7x (64 MiB)


# ----------------------------------------------------------------------------
# Kernel 1: tiled matmul  y = relu?(x @ w + bias)   (bf16 in, f32 accumulate)
# ----------------------------------------------------------------------------
def _matmul_kernel(x_ref, w_ref, b_ref, o_ref, acc_ref, *, relu):
    @pl.when(pl.program_id(2) == 0)
    def _init():
        acc_ref[...] = jnp.zeros_like(acc_ref)

    acc_ref[...] += jnp.dot(x_ref[...], w_ref[...],
                            preferred_element_type=jnp.float32)

    @pl.when(pl.program_id(2) == pl.num_programs(2) - 1)
    def _finalize():
        r = acc_ref[...] + b_ref[...]
        if relu:
            r = jnp.maximum(r, 0.0)
        o_ref[...] = r.astype(o_ref.dtype)


def matmul_bias_act(x, w, bias=None, relu=False, tm=None, tn=None, tk=256,
                    out_dtype=COMPUTE_DTYPE):
    """y = relu?(x @ w + bias); x:(M,K) w:(K,N) bias:(N,). BN scale pre-folded in w."""
    x = x.astype(COMPUTE_DTYPE)
    w = w.astype(COMPUTE_DTYPE)
    M, K = x.shape
    K2, N = w.shape
    assert K == K2
    if bias is None:
        bias = jnp.zeros((N,), jnp.float32)
    bias = bias.reshape(1, N).astype(jnp.float32)

    # Bigger tiles on 128-MiB-VMEM chips (v5e/v6e); 256 on v7x. Clamp to the
    # (8,128)-padded problem so tiny problems use a single block.
    if tm is None:
        tm = 512 if _BIG_VMEM else 256
    if tn is None:
        tn = 512 if _BIG_VMEM else 256
    tm = min(tm, _round_up(M, 8))
    tn = min(tn, _round_up(N, 128))
    tk = min(tk, _round_up(K, 128))
    Mp, Np, Kp = _round_up(M, tm), _round_up(N, tn), _round_up(K, tk)

    xp = jnp.pad(x, ((0, Mp - M), (0, Kp - K)))
    wp = jnp.pad(w, ((0, Kp - K), (0, Np - N)))
    bp = jnp.pad(bias, ((0, 0), (0, Np - N)))

    kernel = functools.partial(_matmul_kernel, relu=relu)
    out = pl.pallas_call(
        kernel,
        out_shape=jax.ShapeDtypeStruct((Mp, Np), out_dtype),
        grid=(Mp // tm, Np // tn, Kp // tk),
        in_specs=[
            pl.BlockSpec((tm, tk), lambda i, j, k: (i, k)),
            pl.BlockSpec((tk, tn), lambda i, j, k: (k, j)),
            pl.BlockSpec((1, tn), lambda i, j, k: (0, j)),
        ],
        out_specs=pl.BlockSpec((tm, tn), lambda i, j, k: (i, j)),
        scratch_shapes=[pltpu.VMEM((tm, tn), jnp.float32)],
        compiler_params=pltpu.CompilerParams(
            dimension_semantics=("parallel", "parallel", "arbitrary"),
            vmem_limit_bytes=_VMEM_LIMIT),
        cost_estimate=pl.CostEstimate(
            flops=2 * Mp * Np * Kp,
            transcendentals=0,
            bytes_accessed=2 * (Mp * Kp + Kp * Np + Mp * Np)),
    )(xp, wp, bp)
    return out[:M, :N]


# ----------------------------------------------------------------------------
# Host-side separable operators (tiny, built at trace time)
# ----------------------------------------------------------------------------
def adaptive_pool_matrix(in_size, out_size):
    """PyTorch AdaptiveAvgPool window semantics as a (out, in) averaging matrix."""
    M = np.zeros((out_size, in_size), np.float32)
    for i in range(out_size):
        start = (i * in_size) // out_size
        end = -((-(i + 1) * in_size) // out_size)   # ceil
        M[i, start:end] = 1.0 / (end - start)
    return M


def bilinear_matrix(in_size, out_size, align_corners):
    """PyTorch F.interpolate(mode='bilinear') as a (out, in) interpolation matrix."""
    M = np.zeros((out_size, in_size), np.float32)
    for i in range(out_size):
        if align_corners:
            src = 0.0 if out_size == 1 else i * (in_size - 1) / (out_size - 1)
        else:
            src = (i + 0.5) * in_size / out_size - 0.5
            src = max(src, 0.0)
        i0 = min(int(np.floor(src)), in_size - 1)
        i1 = min(i0 + 1, in_size - 1)
        f = src - i0
        M[i, i0] += 1.0 - f
        M[i, i1] += f
    return M


# ----------------------------------------------------------------------------
# Kernel 2: all four pyramid stages fused into one block-diagonal matmul chain
#   pooled = P_cat @ feat           (R=sum b^2, C)
#   Y      = mask * relu(pooled @ W_cat + bias)     (block-diag, R x 4*Cout)
#   out    = U_cat @ Y              (S, 4*Cout)   -- no concat, single matmul
# ----------------------------------------------------------------------------
def _psp_kernel(feat_ref, p2_ref, wcat_ref, bcat_ref, mask_ref, ucat_ref, o_ref):
    feat = feat_ref[0]                                            # (S, C) bf16
    pooled = jnp.dot(p2_ref[...], feat,
                     preferred_element_type=jnp.float32)          # (R, C) f32
    y = jnp.dot(pooled.astype(COMPUTE_DTYPE), wcat_ref[...],
                preferred_element_type=jnp.float32)               # (R, 4*Cout)
    y = jnp.maximum(y + bcat_ref[...], 0.0) * mask_ref[...]       # block-diag mask
    out = jnp.dot(ucat_ref[...], y.astype(COMPUTE_DTYPE),
                  preferred_element_type=jnp.float32)             # (S, 4*Cout)
    o_ref[...] = out[None].astype(o_ref.dtype)


def psp_pyramid_fused(feat_flat, stage_params, Hf, Wf):
    """All BIN_SIZES stages in one kernel. Returns (B, Hf*Wf, n_stages*Cout)."""
    B, S, C = feat_flat.shape
    Cout = stage_params[0]["w"].shape[0]
    n_st = len(BIN_SIZES)
    Ctot = n_st * Cout

    # TODO(synk): at real scale (S=3600, C=2048) tile this kernel over S with an
    # accumulated pooling pass ("arbitrary" S axis + pl.when init) so the
    # per-batch feature block is never fully VMEM-resident (v7x 64 MiB budget).
    p_blocks, u_blocks, offs = [], [], []
    off = 0
    for bsz in BIN_SIZES:
        Ph = adaptive_pool_matrix(Hf, bsz)
        Pw = adaptive_pool_matrix(Wf, bsz)
        p_blocks.append(np.kron(Ph, Pw))                          # (b^2, S)
        Uh = bilinear_matrix(bsz, Hf, align_corners=True)         # (Hf, b)
        Uw = bilinear_matrix(bsz, Wf, align_corners=True)         # (Wf, b)
        u_blocks.append(np.kron(Uh, Uw))                          # (S, b^2)
        offs.append(off)
        off += bsz * bsz
    R = off
    P2 = jnp.asarray(np.concatenate(p_blocks, axis=0), COMPUTE_DTYPE)   # (R, S)
    U_cat = jnp.asarray(np.concatenate(u_blocks, axis=1), COMPUTE_DTYPE)  # (S, R)

    mask = np.zeros((R, Ctot), np.float32)
    for s, bsz in enumerate(BIN_SIZES):
        mask[offs[s]:offs[s] + bsz * bsz, s * Cout:(s + 1) * Cout] = 1.0
    mask = jnp.asarray(mask, jnp.float32)

    # 1x1 conv weights with BN scale folded in (per-stage column blocks).
    W_cat = jnp.concatenate(
        [(p["w"].reshape(Cout, C).T * p["bn_scale"][None, :]) for p in stage_params],
        axis=1).astype(COMPUTE_DTYPE)                                    # (C, Ctot)
    b_cat = jnp.concatenate([p["bn_bias"] for p in stage_params]
                            ).reshape(1, Ctot).astype(jnp.float32)

    return pl.pallas_call(
        _psp_kernel,
        out_shape=jax.ShapeDtypeStruct((B, S, Ctot), COMPUTE_DTYPE),
        grid=(B,),
        in_specs=[
            pl.BlockSpec((1, S, C), lambda b: (b, 0, 0)),
            pl.BlockSpec((R, S), lambda b: (0, 0)),
            pl.BlockSpec((C, Ctot), lambda b: (0, 0)),
            pl.BlockSpec((1, Ctot), lambda b: (0, 0)),
            pl.BlockSpec((R, Ctot), lambda b: (0, 0)),
            pl.BlockSpec((S, R), lambda b: (0, 0)),
        ],
        out_specs=pl.BlockSpec((1, S, Ctot), lambda b: (b, 0, 0)),
        compiler_params=pltpu.CompilerParams(
            dimension_semantics=("parallel",),
            vmem_limit_bytes=_VMEM_LIMIT),
        cost_estimate=pl.CostEstimate(
            flops=2 * B * (R * S * C + R * C * Ctot + S * R * Ctot),
            transcendentals=0,
            bytes_accessed=2 * B * S * (C + Ctot) + 2 * (R * S + C * Ctot + S * R)),
    )(feat_flat.astype(COMPUTE_DTYPE), P2, W_cat, b_cat, mask, U_cat)


# ----------------------------------------------------------------------------
# Kernel 3: 3x3 / stride-1 / pad-1 conv, in-kernel im2col, double-buffered halo
# ----------------------------------------------------------------------------
def _conv3x3_kernel(xp_ref, w_ref, b_ref, o_ref, xwin_ref, sem,
                    *, kh, kw, th, wo, cin, cout, relu):
    b = pl.program_id(0)
    m = pl.program_id(1)
    nm = pl.num_programs(1)
    hw = th + kh - 1                                  # halo window rows

    def halo_copy(row_tile, slot):
        r0 = pl.multiple_of(row_tile * th, th)
        return pltpu.make_async_copy(
            xp_ref.at[b, pl.ds(r0, hw)], xwin_ref.at[slot], sem.at[slot])

    slot = m % 2

    # First tile of this batch: issue its own halo DMA.
    @pl.when(m == 0)
    def _():
        halo_copy(m, slot).start()

    # Prefetch the next row tile of this batch into the other slot (double buffer).
    @pl.when(m + 1 < nm)
    def _():
        halo_copy(m + 1, (m + 1) % 2).start()

    halo_copy(m, slot).wait()
    xw = xwin_ref[slot]                               # (hw, Wp, C) bf16

    acc = jnp.zeros((th * wo, cout), jnp.float32)
    for i in range(kh):
        row = xw[i:i + th]                            # (th, Wp, C)
        # Fuse the kw taps into one K = kw*C contraction: 3 matmuls per window
        # instead of 9, with an f32 accumulator.
        # TODO(synk): at real scale (C % 128 == 0, Cin~4096, Cout=512) take the
        # kw shifts on the flattened lane-contiguous (W*C) axis and add
        # Cin(K)/Cout(N) grid tiling so the weight block fits v7x VMEM.
        lhs = jnp.concatenate([row[:, j:j + wo, :] for j in range(kw)], axis=-1)
        acc = acc + jnp.dot(lhs.reshape(th * wo, kw * cin), w_ref[i],
                            preferred_element_type=jnp.float32)
    acc = acc + b_ref[...]
    if relu:
        acc = jnp.maximum(acc, 0.0)
    o_ref[...] = acc.reshape(1, th, wo, cout).astype(o_ref.dtype)


def conv3x3_fused(x, w, bn_scale=None, bn_bias=None, relu=True):
    """NHWC 3x3, stride 1, pad 1 conv + folded-BN + optional ReLU (bf16 in/out)."""
    B, H, W_sp, C = x.shape
    Cout, Cin, kh, kw = w.shape
    assert Cin == C and kh == 3 and kw == 3
    if bn_scale is None:
        bn_scale = jnp.ones((Cout,), jnp.float32)
    if bn_bias is None:
        bn_bias = jnp.zeros((Cout,), jnp.float32)

    # (kh, kw*Cin, Cout) weights with BN scale folded in, bf16.
    w_taps = (jnp.transpose(w, (2, 3, 1, 0)) * bn_scale[None, None, None, :])
    w_taps = w_taps.reshape(kh, kw * C, Cout).astype(COMPUTE_DTYPE)
    bias = bn_bias.reshape(1, Cout).astype(jnp.float32)

    # TODO(synk): at real scale handle the 1px halo inside the kernel (zero-fill
    # scratch edges) instead of an extra HBM round-trip through jnp.pad.
    xp = jnp.pad(x.astype(COMPUTE_DTYPE), ((0, 0), (1, 1), (1, 1), (0, 0)))
    Hp, Wp = H + 2, W_sp + 2
    th = _pick_row_tile(H)

    kernel = functools.partial(_conv3x3_kernel, kh=kh, kw=kw, th=th, wo=W_sp,
                               cin=C, cout=Cout, relu=relu)
    return pl.pallas_call(
        kernel,
        out_shape=jax.ShapeDtypeStruct((B, H, W_sp, Cout), COMPUTE_DTYPE),
        grid=(B, H // th),
        in_specs=[
            pl.BlockSpec(memory_space=pl.ANY),                    # padded input in HBM
            pl.BlockSpec((kh, kw * C, Cout), lambda b, m: (0, 0, 0)),
            pl.BlockSpec((1, Cout), lambda b, m: (0, 0)),
        ],
        out_specs=pl.BlockSpec((1, th, W_sp, Cout), lambda b, m: (b, m, 0, 0)),
        scratch_shapes=[
            pltpu.VMEM((2, th + kh - 1, Wp, C), COMPUTE_DTYPE),   # double-buffered halo
            pltpu.SemaphoreType.DMA((2,)),
        ],
        compiler_params=pltpu.CompilerParams(
            dimension_semantics=("parallel", "arbitrary"),
            vmem_limit_bytes=_VMEM_LIMIT),
        cost_estimate=pl.CostEstimate(
            flops=2 * B * H * W_sp * C * Cout * kh * kw,
            transcendentals=0,
            bytes_accessed=2 * (B * Hp * Wp * C + kh * kw * C * Cout
                                + B * H * W_sp * Cout)),
    )(xp, w_taps, bias)


# ----------------------------------------------------------------------------
# Kernel 4: final 1x1 classifier conv (+bias) fused with SEPARABLE bilinear
# upsample (align_corners=False); lane-dense (ncls, H*W) output (== NCHW).
# ----------------------------------------------------------------------------
def _cls_up_kernel(x_ref, w_ref, b_ref, uwT_ref, uh_ref, o_ref,
                   *, ncls, Hf, Wf, H, W):
    # logits (S, ncls) then transposed to (ncls, S) so all later matmuls have a
    # lane-dense N dimension and the stored block's last dim is H*W.
    lg = jnp.dot(x_ref[0], w_ref[...],
                 preferred_element_type=jnp.float32) + b_ref[...]   # (S, ncls)
    lgT = lg.T.reshape(ncls * Hf, Wf)                               # (ncls*Hf, Wf)
    tw = jnp.dot(lgT.astype(COMPUTE_DTYPE), uwT_ref[...],
                 preferred_element_type=jnp.float32)                # (ncls*Hf, W)
    tw = tw.reshape(ncls, Hf, W)
    # TODO(synk): at real resolution (480x480, ncls up to 150) tile this kernel
    # over output rows / classes instead of the static per-class loop.
    rows = [jnp.dot(uh_ref[...], tw[c].astype(COMPUTE_DTYPE),
                    preferred_element_type=jnp.float32)             # (H, W)
            for c in range(ncls)]
    out = jnp.stack(rows, axis=0).reshape(ncls, H * W)              # lane-dense
    o_ref[...] = out[None].astype(o_ref.dtype)


def classifier_upsample_fused(bott_flat, cls_w, cls_b, Hf, Wf, H, W):
    B, S, Cb = bott_flat.shape
    ncls = cls_w.shape[0]
    Uh = jnp.asarray(bilinear_matrix(Hf, H, align_corners=False),
                     COMPUTE_DTYPE)                                  # (H, Hf)
    UwT = jnp.asarray(bilinear_matrix(Wf, W, align_corners=False).T,
                      COMPUTE_DTYPE)                                 # (Wf, W)
    wm = cls_w.reshape(ncls, Cb).T.astype(COMPUTE_DTYPE)             # (Cb, ncls)
    bm = cls_b.reshape(1, ncls).astype(jnp.float32)
    HW = H * W

    kernel = functools.partial(_cls_up_kernel, ncls=ncls, Hf=Hf, Wf=Wf, H=H, W=W)
    return pl.pallas_call(
        kernel,
        out_shape=jax.ShapeDtypeStruct((B, ncls, HW), jnp.float32),
        grid=(B,),
        in_specs=[
            pl.BlockSpec((1, S, Cb), lambda b: (b, 0, 0)),
            pl.BlockSpec((Cb, ncls), lambda b: (0, 0)),
            pl.BlockSpec((1, ncls), lambda b: (0, 0)),
            pl.BlockSpec((Wf, W), lambda b: (0, 0)),
            pl.BlockSpec((H, Hf), lambda b: (0, 0)),
        ],
        out_specs=pl.BlockSpec((1, ncls, HW), lambda b: (b, 0, 0)),
        compiler_params=pltpu.CompilerParams(
            dimension_semantics=("parallel",),
            vmem_limit_bytes=_VMEM_LIMIT),
        cost_estimate=pl.CostEstimate(
            flops=2 * B * (S * Cb * ncls + ncls * Hf * Wf * W + ncls * H * Hf * W),
            transcendentals=0,
            bytes_accessed=2 * B * S * Cb + 4 * B * ncls * HW),
    )(bott_flat.astype(COMPUTE_DTYPE), wm, bm, UwT, Uh)


# ----------------------------------------------------------------------------
# Glue
# ----------------------------------------------------------------------------
def im2col_nhwc(x, kh, kw, stride, pad):
    """x: (B,H,W,C) -> (B*Ho*Wo, kh*kw*C); K ordered (tap, channel)."""
    B, H, W, C = x.shape
    xp = jnp.pad(x, ((0, 0), (pad, pad), (pad, pad), (0, 0)))
    Ho = (H + 2 * pad - kh) // stride + 1
    Wo = (W + 2 * pad - kw) // stride + 1
    taps = []
    for i in range(kh):
        for j in range(kw):
            taps.append(xp[:, i:i + stride * Ho:stride,
                           j:j + stride * Wo:stride, :])
    col = jnp.concatenate(taps, axis=-1)                         # (B,Ho,Wo,kh*kw*C)
    return col.reshape(B * Ho * Wo, kh * kw * C), Ho, Wo


def fold_bn(gamma, beta, mean, var, eps=1e-5):
    scale = gamma / jnp.sqrt(var + eps)
    bias = beta - mean * scale
    return scale, bias


# ----------------------------------------------------------------------------
# PSPNet forward (NCHW in / NCHW out, channels-last internally)
# ----------------------------------------------------------------------------
def pspnet_forward(x_nchw, params):
    B, Cin, H, W = x_nchw.shape
    x = jnp.transpose(x_nchw, (0, 2, 3, 1)).astype(COMPUTE_DTYPE)  # NHWC

    # --- backbone stand-in: 3x3/stride-2 conv + ReLU (see TODO at top) ---
    c_bb = params["bb_w"].shape[0]
    col, Hf, Wf = im2col_nhwc(x, 3, 3, stride=2, pad=1)
    wm = jnp.transpose(params["bb_w"], (2, 3, 1, 0)).reshape(-1, c_bb)
    feat = matmul_bias_act(col, wm, relu=True).reshape(B, Hf, Wf, c_bb)

    S = Hf * Wf
    feat_flat = feat.reshape(B, S, c_bb)

    # --- PyramidSceneModule: all 4 stages fused (pool + 1x1conv/BN/ReLU + upsample) ---
    psp_out = psp_pyramid_fused(feat_flat, params["stages"], Hf, Wf)
    cat = jnp.concatenate([feat_flat, psp_out], axis=-1).reshape(B, Hf, Wf, -1)

    # --- bottleneck 3x3 conv (pad=1, no bias) + BN + ReLU; Dropout2d eval = identity ---
    bott = conv3x3_fused(cat, params["bott_w"], params["bott_bn_scale"],
                         params["bott_bn_bias"], relu=True)      # (B,Hf,Wf,Cout)

    # --- final 1x1 conv + bias fused with separable bilinear upsample (AC=False) ---
    out_flat = classifier_upsample_fused(bott.reshape(B, S, -1),
                                         params["cls_w"], params["cls_b"],
                                         Hf, Wf, H, W)           # (B, ncls, H*W) f32
    out = out_flat.reshape(B, -1, H, W)                          # already NCHW
    return out[:, :, :H, :W]                                     # no-op slice (fidelity)


# ----------------------------------------------------------------------------
# Deterministic parameter init
# ----------------------------------------------------------------------------
def init_params(key, in_channels, c_bb, num_classes):
    out_c = c_bb // len(BIN_SIZES)
    keys = iter(jax.random.split(key, 32))

    def nrm(shape, s=0.1):
        return s * jax.random.normal(next(keys), shape, jnp.float32)

    params = {"bb_w": nrm((c_bb, in_channels, 3, 3))}

    stages = []
    for _ in BIN_SIZES:
        w = nrm((out_c, c_bb, 1, 1))
        gamma = 1.0 + 0.1 * jax.random.normal(next(keys), (out_c,), jnp.float32)
        beta = 0.05 * jax.random.normal(next(keys), (out_c,), jnp.float32)
        mean = 0.05 * jax.random.normal(next(keys), (out_c,), jnp.float32)
        var = jnp.ones((out_c,), jnp.float32)
        s, b = fold_bn(gamma, beta, mean, var)
        stages.append({"w": w, "bn_scale": s, "bn_bias": b})
    params["stages"] = stages

    cat_c = c_bb + out_c * len(BIN_SIZES)
    params["bott_w"] = nrm((out_c, cat_c, 3, 3))
    gamma = 1.0 + 0.1 * jax.random.normal(next(keys), (out_c,), jnp.float32)
    beta = 0.05 * jax.random.normal(next(keys), (out_c,), jnp.float32)
    mean = 0.05 * jax.random.normal(next(keys), (out_c,), jnp.float32)
    var = jnp.ones((out_c,), jnp.float32)
    params["bott_bn_scale"], params["bott_bn_bias"] = fold_bn(gamma, beta, mean, var)

    params["cls_w"] = nrm((num_classes, out_c, 1, 1))
    params["cls_b"] = 0.01 * jax.random.normal(next(keys), (num_classes,), jnp.float32)
    return params


# ----------------------------------------------------------------------------
if __name__ == "__main__":
    key = jax.random.PRNGKey(0)
    k_x, k_p = jax.random.split(key)

    B, Cin, H, W = 2, 4, 16, 16      # small NCHW input
    num_classes = 3
    c_bb = 32                        # stand-in backbone_out_channels (divisible by 4)

    x = jax.random.normal(k_x, (B, Cin, H, W), jnp.float32)
    params = init_params(k_p, Cin, c_bb, num_classes)

    out = pspnet_forward(x, params)
    out = jax.block_until_ready(out)

    assert out.shape == (B, num_classes, H, W), out.shape
    assert jnp.all(jnp.isfinite(out))
    print("KERNEL_OK")
</pallas_src>

<mosaic_0001>
module attributes {stable_mosaic.version = 11 : i64} {
  func.func @_matmul_kernel(%arg0: i32, %arg1: i32, %arg2: i32, %arg3: memref<128x128xbf16, #tpu.memory_space<vmem>>, %arg4: memref<128x128xbf16, #tpu.memory_space<vmem>>, %arg5: memref<1x128xf32, #tpu.memory_space<vmem>>, %arg6: memref<128x128xbf16, #tpu.memory_space<vmem>>, %arg7: memref<128x128xf32, #tpu.memory_space<vmem>>) attributes {dimension_semantics = [#tpu.dimension_semantics<parallel>, #tpu.dimension_semantics<parallel>, #tpu.dimension_semantics<arbitrary>], iteration_bounds = array<i64: 1, 1, 1>, scalar_prefetch = 0 : i64, scratch_operands = 1 : i64, tpu.core_type = #tpu.core_type<tc>, window_params = [{transform_indices = @transform_0, window_bounds = array<i64: 128, 128>}, {transform_indices = @transform_1, window_bounds = array<i64: 128, 128>}, {transform_indices = @transform_2, window_bounds = array<i64: 1, 128>}, {transform_indices = @transform_3, window_bounds = array<i64: 128, 128>}]} {
    %c0_i32 = arith.constant 0 : i32
    %0 = arith.cmpi eq, %arg2, %c0_i32 : i32
    %1 = arith.extui %0 : i1 to i32
    %c0_i32_0 = arith.constant 0 : i32
    %2 = arith.cmpi ne, %1, %c0_i32_0 : i32
    scf.if %2 {
      %cst_10 = arith.constant 0.000000e+00 : f32
      %12 = vector.broadcast %cst_10 : f32 to vector<128x128xf32>
      %c0_11 = arith.constant 0 : index
      %c0_12 = arith.constant 0 : index
      %13 = vector.load %arg7[%c0_11, %c0_12] : memref<128x128xf32, #tpu.memory_space<vmem>>, vector<128x128xf32>
      tpu.vector_store %arg7[%c0_11, %c0_12], %12 {strides = array<i32>} : memref<128x128xf32, #tpu.memory_space<vmem>>, vector<128x128xf32>,
    } else {
    }
    %c0 = arith.constant 0 : index
    %c0_1 = arith.constant 0 : index
    %3 = vector.load %arg7[%c0, %c0_1] : memref<128x128xf32, #tpu.memory_space<vmem>>, vector<128x128xf32>
    %c0_2 = arith.constant 0 : index
    %c0_3 = arith.constant 0 : index
    %4 = vector.load %arg3[%c0_2, %c0_3] : memref<128x128xbf16, #tpu.memory_space<vmem>>, vector<128x128xbf16>
    %c0_4 = arith.constant 0 : index
    %c0_5 = arith.constant 0 : index
    %5 = vector.load %arg4[%c0_4, %c0_5] : memref<128x128xbf16, #tpu.memory_space<vmem>>, vector<128x128xbf16>
    %cst = arith.constant dense<0.000000e+00> : vector<128x128xf32>
    %6 = tpu.matmul %4, %5, %cst {dimension_numbers = #tpu.dot_dimension_numbers<[1], [0], [0], [1], [0, 0, 1, 1], [], []>} : vector<128x128xbf16>, vector<128x128xbf16>, vector<128x128xf32> -> vector<128x128xf32>
    %7 = arith.addf %3, %6 : vector<128x128xf32>
    %c0_6 = arith.constant 0 : index
    %c0_7 = arith.constant 0 : index
    %8 = vector.load %arg7[%c0_6, %c0_7] : memref<128x128xf32, #tpu.memory_space<vmem>>, vector<128x128xf32>
    tpu.vector_store %arg7[%c0_6, %c0_7], %7 {strides = array<i32>} : memref<128x128xf32, #tpu.memory_space<vmem>>, vector<128x128xf32>,
    %c0_i32_8 = arith.constant 0 : i32
    %9 = arith.cmpi eq, %arg2, %c0_i32_8 : i32
    %10 = arith.extui %9 : i1 to i32
    %c0_i32_9 = arith.constant 0 : i32
    %11 = arith.cmpi ne, %10, %c0_i32_9 : i32
    scf.if %11 {
      %c0_10 = arith.constant 0 : index
      %c0_11 = arith.constant 0 : index
      %12 = vector.load %arg7[%c0_10, %c0_11] : memref<128x128xf32, #tpu.memory_space<vmem>>, vector<128x128xf32>
      %c0_12 = arith.constant 0 : index
      %c0_13 = arith.constant 0 : index
      %13 = vector.load %arg5[%c0_12, %c0_13] : memref<1x128xf32, #tpu.memory_space<vmem>>, vector<1x128xf32>
      %14 = vector.broadcast %13 : vector<1x128xf32> to vector<128x128xf32>
      %15 = arith.addf %12, %14 : vector<128x128xf32>
      %cst_14 = arith.constant 0.000000e+00 : f32
      %16 = vector.broadcast %cst_14 : f32 to vector<128x128xf32>
      %17 = arith.maximumf %15, %16 : vector<128x128xf32>
      %18 = arith.truncf %17 : vector<128x128xf32> to vector<128x128xbf16>
      %c0_15 = arith.constant 0 : index
      %c0_16 = arith.constant 0 : index
      %19 = vector.load %arg6[%c0_15, %c0_16] : memref<128x128xbf16, #tpu.memory_space<vmem>>, vector<128x128xbf16>
      tpu.vector_store %arg6[%c0_15, %c0_16], %18 {strides = array<i32>} : memref<128x128xbf16, #tpu.memory_space<vmem>>, vector<128x128xbf16>,
    } else {
    }
    return
  }
  func.func @transform_0(%arg0: i32, %arg1: i32, %arg2: i32) -> (i32, i32) {
    %c0_i32 = arith.constant 0 : i32
    return %arg0, %arg2 : i32, i32
  }
  func.func @transform_1(%arg0: i32, %arg1: i32, %arg2: i32) -> (i32, i32) {
    %c0_i32 = arith.constant 0 : i32
    return %arg2, %arg1 : i32, i32
  }
  func.func @transform_2(%arg0: i32, %arg1: i32, %arg2: i32) -> (i32, i32) {
    %c0_i32 = arith.constant 0 : i32
    %c0_i32_0 = arith.constant 0 : i32
    return %c0_i32, %arg1 : i32, i32
  }
  func.func @transform_3(%arg0: i32, %arg1: i32, %arg2: i32) -> (i32, i32) {
    %c0_i32 = arith.constant 0 : i32
    return %arg0, %arg1 : i32, i32
  }
}

</mosaic_0001>

<bundles_post_ra>
// kernel: tpu_custom_call.1
= control target key start
LH: loop header
LB: loop body
LE: loop exit
PB: predicated region body
PF: predicated region fallthrough
CT: control target
= control target key end

     0   :  { %8 = vsyncpa [#allocation4], 0  ;;  %s819_s0 = inlined_call_operand.hbm [shape: bf16[128,128], index: 0, kind: input, shape index: {}]   ;;  %s820_s1 = inlined_call_operand.hbm [shape: bf16[128,128], index: 1, kind: input, shape index: {}]   ;;  %s821_s2 = inlined_call_operand.vmem [shape: f32[1,128], index: 2, kind: input, shape index: {}]   ;;  %s822_s3 = inlined_call_operand.hbm [shape: bf16[128,128], index: 3, kind: output, shape index: {}]  }
   0x1   :  { %9 = vsyncpa [#allocation7], 0 }
   0x2   :  { %10 = vsyncpa [#allocation5], 0  ;;  %s746_s12 = smov [#allocation3]   ;;  %s674_s16 = scalar_lea.hbm %s819_s0, 1024 }
   0x3   :  { %s16_s13 = sshll.u32 %s746_s12, 4  ;;  %p675_p0 = scmp.ne.s32.totalorder %s819_s0, %s674_s16  ;;  %s17_s13 = int_to_ptr.vmem [resolvable:$true] %s16_s13 }
   0x4   :  { %p678_p1 = scmp.lt.u32.totalorder %s674_s16, %s819_s0 }
   0x6   :  { %p680_p2 = pnand %p678_p1, %p675_p0 }
   0x8   :  { %683 = shalt.err (!%p680_p2)
}
   0x9   :  { %s684_s21 = scalar_lea.vmem %s17_s13, 1024  ;;  %p689_p4 = scmp.lt.s32.totalorder %s17_s13, %s17_s13 }
   0xa   :  { %p685_p3 = scmp.ne.s32.totalorder %s17_s13, %s684_s21  ;;  %p690_p5 = scmp.lt.s32.totalorder %s684_s21, %s684_s21 }
   0xc   :  { %p691_p6 = por %p690_p5, %p689_p4 }
   0xe   :  { %p692_p7 = pnand %p691_p6, %p685_p3 }
  0x10   :  { %695 = shalt.err (!%p692_p7)
}
  0x11   :  { %s747_s22 = smov 64   ;;  %s748_s23 = smov 4  }
  0x12   :  { %22 = dma.hbm_to_vmem [thread:$0]  %s819_s0, 1024, %s17_s13, [#allocation4], %s747_s22, %s747_s22, %s748_s23  }
  0x13   :  { %s749_s26 = smov [#allocation6]   ;;  %s696_s30 = scalar_lea.hbm %s820_s1, 1024 }
  0x14   :  { %s28_s27 = sshll.u32 %s749_s26, 4  ;;  %p697_p8 = scmp.ne.s32.totalorder %s820_s1, %s696_s30  ;;  %s29_s27 = int_to_ptr.vmem [resolvable:$true] %s28_s27 }
  0x15   :  { %p700_p9 = scmp.lt.u32.totalorder %s696_s30, %s820_s1 }
  0x17   :  { %p702_p10 = pnand %p700_p9, %p697_p8 }
  0x19   :  { %705 = shalt.err (!%p702_p10)
}
  0x1a   :  { %s706_s8 = scalar_lea.vmem %s29_s27, 1024  ;;  %p711_p12 = scmp.lt.s32.totalorder %s29_s27, %s29_s27 }
  0x1b   :  { %p707_p11 = scmp.ne.s32.totalorder %s29_s27, %s706_s8  ;;  %p712_p13 = scmp.lt.s32.totalorder %s706_s8, %s706_s8 }
  0x1d   :  { %p713_p0 = por %p712_p13, %p711_p12 }
  0x1f   :  { %p714_p1 = pnand %p713_p0, %p707_p11 }
  0x21   :  { %717 = shalt.err (!%p714_p1)
}
  0x22   :  { %34 = dma.hbm_to_vmem [thread:$0]  %s820_s1, 1024, %s29_s27, [#allocation7], %s747_s22, %s747_s22, %s748_s23  }
  0x23   :  { %740 = dma.done.wait [#allocation4], 1024  }
  0x24   :  { %741 = vsyncadd [#allocation4], 4294966272 }
  0x25   :  { %742 = dma.done.wait [#allocation7], 1024  }
  0x26   :  { %743 = vsyncadd [#allocation7], 4294966272  ;;  %v658_v0 = vld [vmem:[#allocation6] sm:$0xff]   ;;  %v659_v1 = vld [vmem:[#allocation6 + $0x8] sm:$0xff]  }
  0x27   :  { %605 = vmatprep.subr.bf16.mxu0 %v658_v0  ;;  %637 = vmatprep.subr.bf16.mxu1 %v658_v0  ;;  %v660_v2 = vld [vmem:[#allocation6 + $0x10] sm:$0xff]   ;;  %v661_v3 = vld [vmem:[#allocation6 + $0x18] sm:$0xff]   ;;  %v666_v4 = vld [vmem:[#allocation3] sm:$0xff]  }
  0x28   :  { %606 = vmatpush3.bf16.msra.mxu0 %v658_v0  ;;  %645 = vmatpush3.bf16.msra.mxu1 %v658_v0  ;;  %v667_v5 = vld [vmem:[#allocation3 + $0x20] sm:$0xff]   ;;  %v663_v7 = vld [vmem:[#allocation6 + $0x28] sm:$0xff]   ;;  %v664_v8 = vld [vmem:[#allocation6 + $0x30] sm:$0xff]  }
  0x29   :  { %607 = vmatprep.subr.bf16.mxu0 %v659_v1  ;;  %638 = vmatprep.subr.bf16.mxu1 %v659_v1  ;;  %v662_v6 = vld [vmem:[#allocation6 + $0x20] sm:$0xff]   ;;  %v665_v9 = vld [vmem:[#allocation6 + $0x38] sm:$0xff]   ;;  %v668_v10 = vld [vmem:[#allocation3 + $0x8] sm:$0xff]  }
  0x2a   :  { %621 = vmatprep.mubr.bf16.mxu0 %v666_v4  ;;  %629 = vmatprep.mubr.bf16.mxu1 %v667_v5  ;;  %v669_v11 = vld [vmem:[#allocation3 + $0x28] sm:$0xff]   ;;  %v670_v12 = vld [vmem:[#allocation3 + $0x10] sm:$0xff]   ;;  %v672_v14 = vld [vmem:[#allocation3 + $0x18] sm:$0xff]  }
  0x2b   :  { %v671_v13 = vld [vmem:[#allocation3 + $0x30] sm:$0xff]   ;;  %v673_v15 = vld [vmem:[#allocation3 + $0x38] sm:$0xff]   ;;  %v509_v16 = vld [vmem:[%s821_s2] ss:$0 sm:$0xff]  ;;  %s750_s2 = smov [#allocation8]  }
  0x2c   :  { %608 = vmatpush3.bf16.msra.mxu0 %v659_v1  ;;  %646 = vmatpush3.bf16.msra.mxu1 %v659_v1  ;;  %s480_s11 = sshll.u32 %s750_s2, 4  ;;  %s481_s11 = int_to_ptr.vmem [resolvable:$true] %s480_s11 }
  0x2d   :  { %609 = vmatprep.subr.bf16.mxu0 %v660_v2  ;;  %639 = vmatprep.subr.bf16.mxu1 %v660_v2  ;;  %s718_s12 = scalar_lea.vmem %s481_s11, 1024  ;;  %p723_p3 = scmp.lt.s32.totalorder %s481_s11, %s481_s11 }
  0x2e   :  { %p719_p2 = scmp.ne.s32.totalorder %s481_s11, %s718_s12  ;;  %p724_p4 = scmp.lt.s32.totalorder %s718_s12, %s718_s12 }
  0x30   :  { %610 = vmatpush3.bf16.msra.mxu0 %v660_v2  ;;  %647 = vmatpush3.bf16.msra.mxu1 %v660_v2  ;;  %p725_p5 = por %p724_p4, %p723_p3 }
  0x31   :  { %611 = vmatprep.subr.bf16.mxu0 %v661_v3  ;;  %640 = vmatprep.subr.bf16.mxu1 %v661_v3 }
  0x32   :  { %p726_p6 = pnand %p725_p5, %p719_p2 }
  0x34   :  { %612 = vmatpush3.bf16.msra.mxu0 %v661_v3  ;;  %648 = vmatpush3.bf16.msra.mxu1 %v661_v3 }
  0x35   :  { %613 = vmatprep.subr.bf16.mxu0 %v662_v6  ;;  %641 = vmatprep.subr.bf16.mxu1 %v662_v6 }
  0x38   :  { %614 = vmatpush3.bf16.msra.mxu0 %v662_v6  ;;  %649 = vmatpush3.bf16.msra.mxu1 %v662_v6 }
  0x39   :  { %615 = vmatprep.subr.bf16.mxu0 %v663_v7  ;;  %642 = vmatprep.subr.bf16.mxu1 %v663_v7 }
  0x3c   :  { %616 = vmatpush3.bf16.msra.mxu0 %v663_v7  ;;  %650 = vmatpush3.bf16.msra.mxu1 %v663_v7 }
  0x3d   :  { %617 = vmatprep.subr.bf16.mxu0 %v664_v8  ;;  %643 = vmatprep.subr.bf16.mxu1 %v664_v8 }
  0x40   :  { %618 = vmatpush3.bf16.msra.mxu0 %v664_v8  ;;  %651 = vmatpush3.bf16.msra.mxu1 %v664_v8 }
  0x41   :  { %619 = vmatprep.subr.bf16.mxu0 %v665_v9  ;;  %644 = vmatprep.subr.bf16.mxu1 %v665_v9 }
  0x44   :  { %620 = vmatpush3.bf16.msra.mxu0 %v665_v9  ;;  %652 = vmatpush3.bf16.msra.mxu1 %v665_v9 }
  0x47   :  { %622 = vmatmul.mubr.bf16.vlgmr.msra.gmra.mrb[0].mxu0 %v668_v10  ;;  %630 = vmatmul.mubr.bf16.vlgmr.msra.gmra.mrb[0].mxu1 %v669_v11 }
  0x48   :  { %625 = vmatprep.mubr.bf16.mxu0 %v670_v12  ;;  %633 = vmatprep.mubr.bf16.mxu1 %v671_v13 }
  0x4f   :  { %626 = vmatmul.mubr.bf16.gmra.mrb[4].mxu0 %v672_v14  ;;  %634 = vmatmul.mubr.bf16.gmra.mrb[4].mxu1 %v673_v15 }
 0x11a   :  { %v623_v17 = vpop.f32.mrb[0].mxu0  ;;  %v631_v18 = vpop.f32.mrb[0].mxu1 }
 0x11b   :  { %v365_v19 = vadd.f32 %v623_v17, %v509_v16  ;;  %v373_v20 = vadd.f32 %v631_v18, %v509_v16  ;;  %v242_v21 = vpop.f32.mrb[1].mxu0  ;;  %v274_v22 = vpop.f32.mrb[1].mxu1 }
 0x11c   :  { %v363_v23 = vadd.f32 %v509_v16, %v242_v21  ;;  %v371_v24 = vadd.f32 %v509_v16, %v274_v22  ;;  %v624_v25 = vpop.f32.mrb[2].mxu0  ;;  %v632_v26 = vpop.f32.mrb[2].mxu1 }
 0x11d   :  { %v366_v27 = vadd.f32 %v624_v25, %v509_v16  ;;  %v374_v28 = vadd.f32 %v632_v26, %v509_v16  ;;  %v245_v29 = vpop.f32.mrb[3].mxu0  ;;  %v277_v30 = vpop.f32.mrb[3].mxu1  ;;  %v381_v33 = vmax.f32 %v365_v19, 0.0  ;;  %v389_v34 = vmax.f32 %v373_v20, 0.0 }
 0x11e   :  { %v364_v31 = vadd.f32 %v509_v16, %v245_v29  ;;  %v372_v32 = vadd.f32 %v509_v16, %v277_v30  ;;  %v379_v37 = vmax.f32 %v363_v23, 0.0  ;;  %v387_v38 = vmax.f32 %v371_v24, 0.0 }
 0x11f   :  { %v382_v35 = vmax.f32 %v366_v27, 0.0  ;;  %v390_v36 = vmax.f32 %v374_v28, 0.0 }
 0x120   :  { %v380_v39 = vmax.f32 %v364_v31, 0.0  ;;  %v388_v40 = vmax.f32 %v372_v32, 0.0 }
 0x121   :  { %v550_v41 = vpack.c.bf16 %v382_v35, %v381_v33  ;;  %v570_v42 = vpack.c.bf16 %v390_v36, %v389_v34 }
 0x122   :  { %v545_v43 = vpack.c.bf16 %v380_v39, %v379_v37  ;;  %v565_v44 = vpack.c.bf16 %v388_v40, %v387_v38  ;;  %v627_v45 = vpop.f32.mrb[4].mxu0  ;;  %v635_v46 = vpop.f32.mrb[4].mxu1 }
 0x123   :  { %582 = vst [vmem:[#allocation8 + $0x8] sm:$0xff] %v550_v41   ;;  %586 = vst [vmem:[#allocation8 + $0x28] sm:$0xff] %v570_v42   ;;  %v369_v47 = vadd.f32 %v627_v45, %v509_v16  ;;  %v377_v48 = vadd.f32 %v635_v46, %v509_v16  ;;  %v258_v49 = vpop.f32.mrb[5].mxu0  ;;  %v290_v50 = vpop.f32.mrb[5].mxu1 }
 0x124   :  { %546 = vst [vmem:[#allocation8] sm:$0xff] %v545_v43   ;;  %585 = vst [vmem:[#allocation8 + $0x20] sm:$0xff] %v565_v44   ;;  %v367_v51 = vadd.f32 %v509_v16, %v258_v49  ;;  %v375_v52 = vadd.f32 %v509_v16, %v290_v50  ;;  %v628_v53 = vpop.f32.mrb[6].mxu0  ;;  %v636_v54 = vpop.f32.mrb[6].mxu1 }
 0x125   :  { %v370_v55 = vadd.f32 %v628_v53, %v509_v16  ;;  %v378_v56 = vadd.f32 %v636_v54, %v509_v16  ;;  %v261_v57 = vpop.f32.mrb[7].mxu0  ;;  %v293_v58 = vpop.f32.mrb[7].mxu1  ;;  %v385_v61 = vmax.f32 %v369_v47, 0.0  ;;  %v393_v62 = vmax.f32 %v377_v48, 0.0 }
 0x126   :  { %v368_v59 = vadd.f32 %v509_v16, %v261_v57  ;;  %v376_v60 = vadd.f32 %v509_v16, %v293_v58  ;;  %v383_v1 = vmax.f32 %v367_v51, 0.0  ;;  %v391_v2 = vmax.f32 %v375_v52, 0.0 }
 0x127   :  { %v386_v63 = vmax.f32 %v370_v55, 0.0  ;;  %v394_v0 = vmax.f32 %v378_v56, 0.0 }
 0x128   :  { %v384_v3 = vmax.f32 %v368_v59, 0.0  ;;  %v392_v4 = vmax.f32 %v376_v60, 0.0 }
 0x129   :  { %v560_v5 = vpack.c.bf16 %v386_v63, %v385_v61  ;;  %v580_v6 = vpack.c.bf16 %v394_v0, %v393_v62 }
 0x12a   :  { %v555_v7 = vpack.c.bf16 %v384_v3, %v383_v1  ;;  %v575_v8 = vpack.c.bf16 %v392_v4, %v391_v2 }
 0x12b   :  { %584 = vst [vmem:[#allocation8 + $0x18] sm:$0xff] %v560_v5   ;;  %588 = vst [vmem:[#allocation8 + $0x38] sm:$0xff] %v580_v6  }
 0x12c   :  { %583 = vst [vmem:[#allocation8 + $0x10] sm:$0xff] %v555_v7   ;;  %587 = vst [vmem:[#allocation8 + $0x30] sm:$0xff] %v575_v8  }
 0x12d   :  { %729 = shalt.err (!%p726_p6)
}
 0x12e   :  { %s730_s15 = scalar_lea.hbm %s822_s3, 1024 }
 0x12f   :  { %p731_p7 = scmp.ne.s32.totalorder %s822_s3, %s730_s15  ;;  %p734_p8 = scmp.lt.u32.totalorder %s730_s15, %s822_s3 }
 0x131   :  { %p736_p9 = pnand %p734_p8, %p731_p7 }
 0x133   :  { %739 = shalt.err (!%p736_p9)
}
 0x134   :  { %486 = dma.vmem_to_hbm [thread:$0]  %s481_s11, 1024, %s822_s3, [#allocation5], %s747_s22, %s747_s22, %s748_s23  }
 0x135   :  { %744 = dma.done.wait [#allocation5], 1024  }
 0x136   :  { %745 = vsyncadd [#allocation5], 4294966272 }
 0x137   :  { %490 = vsyncpa [#allocation4], 1 }
 0x138   :  { %491 = vsyncpa [#allocation7], 1 }
 0x139   :  { %492 = vsyncpa [#allocation5], 1 }

</bundles_post_ra>
